<compile_context>
chip_gen: v5e
topology: v5e:2x2
jax: 0.10.0
libtpu: 0.0.40
codegen_flags: <defaults>
</compile_context>

<pallas_src>
import jax
import jax.numpy as jnp
from jax.experimental import pallas as pl
from jax.experimental.pallas import tpu as pltpu

EMBED_DIM = 32      # synthetic backbone output feature dim
OUT_DIM = 16        # synthetic head output dim
CHANNELS = 4
LANE = 128          # vreg lane width
TN_MAX = 128        # max batch rows per grid step (sweep 128-256 at real shapes)
HW_TILE_CAP = 1024  # max spatial elems per grid step (divides 96^2 and 224^2 exactly)


def _round_up(x, m):
    return (x + m - 1) // m * m


def _cdiv(a, b):
    return (a + b - 1) // b


# ----------------------------- Pallas kernel --------------------------------

def _make_group_kernel(hw, hw_tile):
    """GAP over HW (tiled, f32 accumulation) -> folded linear -> bias."""
    inv_hw = 1.0 / float(hw)          # compile-time constant per resolution group
    ragged = (hw % hw_tile) != 0

    def kernel(x_ref, w_ref, b_ref, o_ref, acc_ref):
        # x_ref:   (TN, C, HW_TILE)  bf16 crop tile
        # w_ref:   (C, O_PAD)        bf16 folded backbone@head weight
        # b_ref:   (1, O_PAD)        f32 folded bias
        # o_ref:   (TN, O_PAD)       f32 lane-dense output tile
        # acc_ref: (TN, C)           f32 pooled-sum accumulator (lives across hw axis)
        j = pl.program_id(1)

        @pl.when(j == 0)
        def _():
            acc_ref[...] = jnp.zeros_like(acc_ref)

        x = x_ref[...]
        if ragged:  # mask out-of-range lanes of the last spatial tile
            lane = jax.lax.broadcasted_iota(jnp.int32, x.shape, 2)
            x = jnp.where(j * hw_tile + lane < hw, x, jnp.zeros_like(x))
        acc_ref[...] += jnp.sum(x.astype(jnp.float32), axis=-1)   # f32 GAP accumulation

        @pl.when(j == pl.num_programs(1) - 1)
        def _():
            pooled = (acc_ref[...] * inv_hw).astype(w_ref.dtype)          # (TN, C) bf16
            out = jnp.dot(pooled, w_ref[...],
                          preferred_element_type=jnp.float32) + b_ref[...]
            o_ref[...] = out

    return kernel


def _group_forward(x, w_f, b_f):
    """Fused GAP + folded linear over one resolution group x: (N, C, HW)."""
    n, c, hw = x.shape
    o_pad = w_f.shape[1]

    tn = min(TN_MAX, n)               # n < TN_MAX -> one full-extent batch block
    grid_n = _cdiv(n, tn)
    hw_tile = hw if hw <= HW_TILE_CAP else HW_TILE_CAP
    grid_hw = _cdiv(hw, hw_tile)

    out = pl.pallas_call(
        _make_group_kernel(hw, hw_tile),
        out_shape=jax.ShapeDtypeStruct((grid_n * tn, o_pad), jnp.float32),
        grid=(grid_n, grid_hw),
        in_specs=[
            pl.BlockSpec((tn, c, hw_tile), lambda i, j: (i, 0, j)),
            pl.BlockSpec((c, o_pad), lambda i, j: (0, 0)),
            pl.BlockSpec((1, o_pad), lambda i, j: (0, 0)),
        ],
        out_specs=pl.BlockSpec((tn, o_pad), lambda i, j: (i, 0)),
        scratch_shapes=[pltpu.VMEM((tn, c), jnp.float32)],
        compiler_params=pltpu.CompilerParams(
            dimension_semantics=("parallel", "arbitrary"),
            vmem_limit_bytes=32 * 1024 * 1024),
    )(x, w_f, b_f)
    return out[:n]                    # drop ragged-batch rows (if any)


# ------------------------------ wrapper --------------------------------------

def multi_crop_forward(crops, params):
    """MultiCropWrapper.forward: backbone over each consecutive same-resolution
    group (in crop order), concat, then head — backbone+head fused (and folded)
    into one Pallas call per resolution group."""
    if not isinstance(crops, (list, tuple)):
        crops = [crops]

    c_dim = crops[0].shape[1]

    # Fold the linear backbone + head once (tiny); pad O to 128 lanes so the
    # output store is an unmasked full-lane vst.  Zero padding keeps math exact.
    wb = params["w_backbone"].astype(jnp.float32)     # (C, D)
    bb = params["b_backbone"].astype(jnp.float32)     # (1, D)
    wh = params["w_head"].astype(jnp.float32)         # (D, O)
    bh = params["b_head"].astype(jnp.float32)         # (1, O)
    o_dim = wh.shape[1]
    o_pad = _round_up(o_dim, LANE)
    w_f = jnp.pad(wb @ wh, ((0, 0), (0, o_pad - o_dim))).astype(jnp.bfloat16)
    b_f = jnp.pad(bb @ wh + bh, ((0, 0), (0, o_pad - o_dim)))        # f32

    # Group consecutive crops of equal resolution (torch.unique_consecutive).
    groups = []
    for crop in crops:
        key = crop.shape[-1]
        if groups and groups[-1][0] == key:
            groups[-1][1].append(crop)
        else:
            groups.append((key, [crop]))

    outs = []
    for _, grp in groups:
        x = grp[0] if len(grp) == 1 else jnp.concatenate(grp, axis=0)  # torch.cat
        n, _, h, w = x.shape
        x = x.reshape(n, c_dim, h * w)        # free row-major collapse, no HBM copy
        outs.append(_group_forward(x, w_f, b_f))

    out = outs[0] if len(outs) == 1 else jnp.concatenate(outs, axis=0)
    return out[:, :o_dim]


# ------------------------------ reference -----------------------------------

def _reference(crops, params):
    feats = []
    for c in crops:
        x = c.astype(jnp.float32)
        pooled = jnp.mean(x.reshape(x.shape[0], x.shape[1], -1), axis=-1)
        feats.append(pooled @ params["w_backbone"] + params["b_backbone"])
    feats = jnp.concatenate(feats, axis=0)
    return feats @ params["w_head"] + params["b_head"]


# -------------------------------- main ---------------------------------------

if __name__ == "__main__":
    key = jax.random.PRNGKey(0)
    k_wb, k_bb, k_wh, k_bh, k1, k2, k3, k4 = jax.random.split(key, 8)

    params = {
        "w_backbone": jax.random.normal(k_wb, (CHANNELS, EMBED_DIM), jnp.float32) * 0.1,
        "b_backbone": jax.random.normal(k_bb, (1, EMBED_DIM), jnp.float32) * 0.01,
        "w_head":     jax.random.normal(k_wh, (EMBED_DIM, OUT_DIM), jnp.float32) * 0.1,
        "b_head":     (jax.random.normal(k_bh, (OUT_DIM,), jnp.float32) * 0.01).reshape(1, OUT_DIM),
    }

    # Multi-crop input: 2 "global" 16x16 crops followed by 2 "local" 8x8 crops,
    # batch=2, channels=4 (NCHW).  Activations supplied in bf16 (MXU-native,
    # halves the dominant HBM read of x inside the kernel).
    crops = [
        jax.random.normal(k1, (2, CHANNELS, 16, 16), jnp.float32).astype(jnp.bfloat16),
        jax.random.normal(k2, (2, CHANNELS, 16, 16), jnp.float32).astype(jnp.bfloat16),
        jax.random.normal(k3, (2, CHANNELS, 8, 8), jnp.float32).astype(jnp.bfloat16),
        jax.random.normal(k4, (2, CHANNELS, 8, 8), jnp.float32).astype(jnp.bfloat16),
    ]

    out = multi_crop_forward(crops, params)
    out = jax.block_until_ready(out)

    ref = _reference(crops, params)
    assert out.shape == (8, OUT_DIM), out.shape
    assert jnp.allclose(out, ref, atol=1e-3, rtol=1e-2), \
        float(jnp.max(jnp.abs(out - ref)))

    print("KERNEL_OK")
</pallas_src>

<mosaic_0001>
module attributes {stable_mosaic.version = 11 : i64} {
  func.func @kernel(%arg0: i32, %arg1: i32, %arg2: memref<4x4x256xbf16, #tpu.memory_space<vmem>>, %arg3: memref<4x128xbf16, #tpu.memory_space<vmem>>, %arg4: memref<1x128xf32, #tpu.memory_space<vmem>>, %arg5: memref<4x128xf32, #tpu.memory_space<vmem>>, %arg6: memref<4x4xf32, #tpu.memory_space<vmem>>) attributes {dimension_semantics = [#tpu.dimension_semantics<parallel>, #tpu.dimension_semantics<arbitrary>], iteration_bounds = array<i64: 1, 1>, scalar_prefetch = 0 : i64, scratch_operands = 1 : i64, tpu.core_type = #tpu.core_type<tc>, window_params = [{transform_indices = @transform_0, window_bounds = array<i64: 4, 4, 256>}, {pipeline_mode = #tpu.pipeline_mode<synchronous>, transform_indices = @transform_1, window_bounds = array<i64: 4, 128>}, {pipeline_mode = #tpu.pipeline_mode<synchronous>, transform_indices = @transform_2, window_bounds = array<i64: 1, 128>}, {transform_indices = @transform_3, window_bounds = array<i64: 4, 128>}]} {
    %c0_i32 = arith.constant 0 : i32
    %0 = arith.cmpi eq, %arg1, %c0_i32 : i32
    %1 = arith.extui %0 : i1 to i32
    %c0_i32_0 = arith.constant 0 : i32
    %2 = arith.cmpi ne, %1, %c0_i32_0 : i32
    scf.if %2 {
      %cst_9 = arith.constant 0.000000e+00 : f32
      %12 = vector.broadcast %cst_9 : f32 to vector<4x4xf32>
      %c0_10 = arith.constant 0 : index
      %c0_11 = arith.constant 0 : index
      %13 = vector.load %arg6[%c0_10, %c0_11] : memref<4x4xf32, #tpu.memory_space<vmem>>, vector<4x4xf32>
      tpu.vector_store %arg6[%c0_10, %c0_11], %12 {strides = array<i32>} : memref<4x4xf32, #tpu.memory_space<vmem>>, vector<4x4xf32>,
    } else {
    }
    %c0 = arith.constant 0 : index
    %c0_1 = arith.constant 0 : index
    %c0_2 = arith.constant 0 : index
    %3 = vector.load %arg2[%c0, %c0_1, %c0_2] : memref<4x4x256xbf16, #tpu.memory_space<vmem>>, vector<4x4x256xbf16>
    %c0_3 = arith.constant 0 : index
    %c0_4 = arith.constant 0 : index
    %4 = vector.load %arg6[%c0_3, %c0_4] : memref<4x4xf32, #tpu.memory_space<vmem>>, vector<4x4xf32>
    %5 = arith.extf %3 : vector<4x4x256xbf16> to vector<4x4x256xf32>
    %cst = arith.constant dense<0.000000e+00> : vector<4x4xf32>
    %6 = vector.multi_reduction <add>, %5, %cst [2] : vector<4x4x256xf32> to vector<4x4xf32>
    %7 = arith.addf %4, %6 : vector<4x4xf32>
    %c0_5 = arith.constant 0 : index
    %c0_6 = arith.constant 0 : index
    %8 = vector.load %arg6[%c0_5, %c0_6] : memref<4x4xf32, #tpu.memory_space<vmem>>, vector<4x4xf32>
    tpu.vector_store %arg6[%c0_5, %c0_6], %7 {strides = array<i32>} : memref<4x4xf32, #tpu.memory_space<vmem>>, vector<4x4xf32>,
    %c0_i32_7 = arith.constant 0 : i32
    %9 = arith.cmpi eq, %arg1, %c0_i32_7 : i32
    %10 = arith.extui %9 : i1 to i32
    %c0_i32_8 = arith.constant 0 : i32
    %11 = arith.cmpi ne, %10, %c0_i32_8 : i32
    scf.if %11 {
      %c0_9 = arith.constant 0 : index
      %c0_10 = arith.constant 0 : index
      %12 = vector.load %arg6[%c0_9, %c0_10] : memref<4x4xf32, #tpu.memory_space<vmem>>, vector<4x4xf32>
      %cst_11 = arith.constant 3.906250e-03 : f32
      %13 = vector.broadcast %cst_11 : f32 to vector<4x4xf32>
      %14 = arith.mulf %12, %13 : vector<4x4xf32>
      %15 = arith.truncf %14 : vector<4x4xf32> to vector<4x4xbf16>
      %c0_12 = arith.constant 0 : index
      %c0_13 = arith.constant 0 : index
      %16 = vector.load %arg3[%c0_12, %c0_13] : memref<4x128xbf16, #tpu.memory_space<vmem>>, vector<4x128xbf16>
      %cst_14 = arith.constant dense<0.000000e+00> : vector<4x128xf32>
      %17 = tpu.matmul %15, %16, %cst_14 {dimension_numbers = #tpu.dot_dimension_numbers<[1], [0], [0], [1], [0, 0, 1, 1], [], []>} : vector<4x4xbf16>, vector<4x128xbf16>, vector<4x128xf32> -> vector<4x128xf32>
      %c0_15 = arith.constant 0 : index
      %c0_16 = arith.constant 0 : index
      %18 = vector.load %arg4[%c0_15, %c0_16] : memref<1x128xf32, #tpu.memory_space<vmem>>, vector<1x128xf32>
      %19 = vector.broadcast %18 : vector<1x128xf32> to vector<4x128xf32>
      %20 = arith.addf %17, %19 : vector<4x128xf32>
      %c0_17 = arith.constant 0 : index
      %c0_18 = arith.constant 0 : index
      %21 = vector.load %arg5[%c0_17, %c0_18] : memref<4x128xf32, #tpu.memory_space<vmem>>, vector<4x128xf32>
      tpu.vector_store %arg5[%c0_17, %c0_18], %20 {strides = array<i32>} : memref<4x128xf32, #tpu.memory_space<vmem>>, vector<4x128xf32>,
    } else {
    }
    return
  }
  func.func @transform_0(%arg0: i32, %arg1: i32) -> (i32, i32, i32) {
    %c0_i32 = arith.constant 0 : i32
    %c0_i32_0 = arith.constant 0 : i32
    return %arg0, %c0_i32, %arg1 : i32, i32, i32
  }
  func.func @transform_1(%arg0: i32, %arg1: i32) -> (i32, i32) {
    %c0_i32 = arith.constant 0 : i32
    %c0_i32_0 = arith.constant 0 : i32
    %c0_i32_1 = arith.constant 0 : i32
    return %c0_i32, %c0_i32_0 : i32, i32
  }
  func.func @transform_2(%arg0: i32, %arg1: i32) -> (i32, i32) {
    %c0_i32 = arith.constant 0 : i32
    %c0_i32_0 = arith.constant 0 : i32
    %c0_i32_1 = arith.constant 0 : i32
    return %c0_i32, %c0_i32_0 : i32, i32
  }
  func.func @transform_3(%arg0: i32, %arg1: i32) -> (i32, i32) {
    %c0_i32 = arith.constant 0 : i32
    %c0_i32_0 = arith.constant 0 : i32
    return %arg0, %c0_i32 : i32, i32
  }
}

</mosaic_0001>

<bundles_post_ra>
// kernel: tpu_custom_call.1
= control target key start
LH: loop header
LB: loop body
LE: loop exit
PB: predicated region body
PF: predicated region fallthrough
CT: control target
= control target key end

     0   :  { %8 = vsyncpa [#allocation4], 0  ;;  %s323_s0 = inlined_call_operand.hbm [shape: bf16[4,4,256], index: 0, kind: input, shape index: {}]   ;;  %s324_s1 = inlined_call_operand.hbm [shape: bf16[4,128], index: 1, kind: input, shape index: {}]   ;;  %s325_s2 = inlined_call_operand.vmem [shape: f32[1,128], index: 2, kind: input, shape index: {}]   ;;  %s326_s3 = inlined_call_operand.hbm [shape: f32[4,128], index: 3, kind: output, shape index: {}]  }
   0x1   :  { %9 = vsyncpa [#allocation7], 0 }
   0x2   :  { %10 = vsyncpa [#allocation5], 0  ;;  %s15_s14 = sshll.u32 %s323_s0, 4  ;;  %s275_s15 = smov [#allocation3]   ;;  %s16_s14 = int_to_ptr.hbm [resolvable:$true] %s15_s14 }
   0x3   :  { %s17_s16 = sshll.u32 %s275_s15, 4  ;;  %s29_s19 = sshll.u32 %s324_s1, 4  ;;  %s18_s16 = int_to_ptr.vmem [resolvable:$true] %s17_s16  ;;  %s30_s19 = int_to_ptr.hbm [resolvable:$true] %s29_s19 }
   0x4   :  { %s276_s20 = smov 64   ;;  %s277_s21 = smov 4  }
   0x5   :  { %23 = dma.hbm_to_vmem [thread:$0]  %s16_s14, 256, %s18_s16, [#allocation4], %s276_s20, %s276_s20, %s277_s21  }
   0x6   :  { %s278_s22 = smov [#allocation6]  }
   0x7   :  { %s31_s23 = sshll.u32 %s278_s22, 4  ;;  %s32_s23 = int_to_ptr.vmem [resolvable:$true] %s31_s23 }
   0x8   :  { %34 = dma.hbm_to_vmem [thread:$0]  %s30_s19, 32, %s32_s23, [#allocation7]  }
   0x9   :  { %269 = dma.done.wait [#allocation4], 256  }
   0xa   :  { %270 = vsyncadd [#allocation4], 4294967040 }
   0xb   :  { %271 = dma.done.wait [#allocation7], 32  }
   0xc   :  { %272 = vsyncadd [#allocation7], 4294967264  ;;  %v182_v0 = vld [vmem:[#allocation3] sm:$0xff]   ;;  %v189_v1 = vld [vmem:[#allocation3 + $0x8] sm:$0xff]   ;;  %vm88_vm0 = vcmask 1043456   ;;  %vm50_vm1 = vcmask 27648   ;;  %v113_v30 = vlaneseq }
   0xd   :  { %v183_v2 = vunpack.c.l.bf16 %v182_v0  ;;  %v187_v3 = vunpack.c.l.bf16 %v189_v1  ;;  %v184_v4 = vunpack.c.h.bf16 %v182_v0  ;;  %v188_v5 = vunpack.c.h.bf16 %v189_v1  ;;  %v135_v27 = vld [vmem:[#allocation6] sm:$0x3]  ;;  %v196_v47 = vld [vmem:[%s325_s2] ss:$0 sm:$0xff]  ;;  %s280_s24 = smov [#allocation8]   ;;  %s169_s28 = sshll.u32 %s326_s3, 4  ;;  %s170_s28 = int_to_ptr.hbm [resolvable:$true] %s169_s28 }
   0xe   :  { %v279_v26 = vmov 0.0   ;;  %vm144_vm2 = vcmask 1041408   ;;  %v114_v32 = vand.u32 127, %v113_v30  ;;  %vm119_vm3 = vcmask 1041409   ;;  %s167_s25 = sshll.u32 %s280_s24, 4  ;;  %s168_s25 = int_to_ptr.vmem [resolvable:$true] %s167_s25 }
   0xf   :  { %65 = vst [vmem:[#allocation1] ss:$2 sm:$0xff] %v183_v2  ;;  %v146_v28 = vsel %vm144_vm2, %v135_v27, 0  ;;  %vm121_vm4 = vcmask 1042434   ;;  %vm123_vm5 = vcmask 1043459   ;;  %vm140_vm6 = vcmask 31744  }
  0x10   :  { %73 = vst [vmem:[#allocation1 + $0x20] ss:$2 sm:$0xff] %v187_v3  ;;  %155 = vmatpush.bf16.msra.mxu0 %v146_v28 }
  0x11   :  { %69 = vst [vmem:[#allocation1 + $0x10] ss:$2 sm:$0xff] %v184_v4 }
  0x12   :  { %77 = vst [vmem:[#allocation1 + $0x30] ss:$2 sm:$0xff] %v188_v5 }
  0x13   :  { %51 = vst.msk [vmem:[#allocation2] sm:$0xf] %vm50_vm1, %v279_v26 }
  0x16   :  { %v66_v6 = vld.sshfl [vmem:[#allocation1] sm:$0xff pattern:$0x75316420]  ;;  %v67_v7 = vld.sshfl [vmem:[#allocation1 + $0x8] sm:$0xff pattern:$0x75316420] }
  0x17   :  { %v89_v8 = vsel %vm88_vm0, %v66_v6, 0.0  ;;  %v90_v9 = vsel %vm88_vm0, %v67_v7, 0.0  ;;  %v74_v10 = vld.sshfl [vmem:[#allocation1 + $0x20] sm:$0xff pattern:$0x75316420] }
  0x18   :  { %v91_v11 = vadd.f32 %v90_v9, %v89_v8  ;;  %v75_v12 = vld.sshfl [vmem:[#allocation1 + $0x28] sm:$0xff pattern:$0x75316420]  ;;  %v99_v13 = vsel %vm88_vm0, %v74_v10, 0.0 }
  0x19   :  { %v100_v14 = vsel %vm88_vm0, %v75_v12, 0.0  ;;  %v70_v15 = vld.sshfl [vmem:[#allocation1 + $0x10] sm:$0xff pattern:$0x75316420] }
  0x1a   :  { %92 = vadd.xlane.f32.xlu0 %v91_v11  ;;  %v101_v16 = vadd.f32 %v100_v14, %v99_v13  ;;  %v71_v17 = vld.sshfl [vmem:[#allocation1 + $0x18] sm:$0xff pattern:$0x75316420]  ;;  %v94_v18 = vsel %vm88_vm0, %v70_v15, 0.0  ;;  %v56_v39 = vld [vmem:[#allocation2] sm:$0xf] }
  0x1b   :  { %v95_v19 = vsel %vm88_vm0, %v71_v17, 0.0  ;;  %v78_v20 = vld.sshfl [vmem:[#allocation1 + $0x30] sm:$0xff pattern:$0x75316420] }
  0x1c   :  { %102 = vadd.xlane.f32.xlu1 %v101_v16  ;;  %v79_v21 = vld.sshfl [vmem:[#allocation1 + $0x38] sm:$0xff pattern:$0x75316420]  ;;  %v104_v22 = vsel %vm88_vm0, %v78_v20, 0.0  ;;  %v96_v24 = vadd.f32 %v95_v19, %v94_v18 }
  0x1d   :  { %v105_v23 = vsel %vm88_vm0, %v79_v21, 0.0 }
  0x1e   :  { %v106_v25 = vadd.f32 %v105_v23, %v104_v22 }
  0x22   :  { %97 = vadd.xlane.f32.xlu0 %v96_v24 }
  0x24   :  { %107 = vadd.xlane.f32.xlu1 %v106_v25 }
  0x8d   :  { %v93_v29 = vpop.xlane.xlu0 %92 }
  0x8e   :  { %v115_v34 = vperm.slane %v93_v29, %v114_v32 }
  0x8f   :  { %v103_v31 = vpop.xlane.xlu1 %102 }
  0x90   :  { %v117_v36 = vperm.slane %v103_v31, %v114_v32 }
  0x95   :  { %v98_v33 = vpop.xlane.xlu0 %97 }
  0x96   :  { %v116_v35 = vperm.slane %v98_v33, %v114_v32 }
  0x97   :  { %v108_v37 = vpop.xlane.xlu1 %107 }
  0x98   :  { %v120_v38 = vsel %vm119_vm3, %v116_v35, %v115_v34  ;;  %v118_v40 = vperm.slane %v108_v37, %v114_v32 }
  0x99   :  { %v122_v41 = vsel %vm121_vm4, %v117_v36, %v120_v38 }
  0x9a   :  { %v124_v42 = vsel %vm123_vm5, %v118_v40, %v122_v41 }
  0x9b   :  { %v126_v43 = vadd.f32 %v124_v42, %v56_v39 }
  0x9d   :  { %128 = vst.msk [vmem:[#allocation2] sm:$0xf] %vm50_vm1, %v126_v43 }
  0xa4   :  { %v132_v44 = vld [vmem:[#allocation2] sm:$0xf] }
  0xa5   :  { %v133_v45 = vmul.f32 0.00390625, %v132_v44 }
  0xa7   :  { %v134_v46 = vpack.c.bf16 %v133_v45, %v133_v45 }
  0xa9   :  { %180 = vmatmul.msk.bf16.vlgmr.msra.gmra.mxu0 %vm140_vm6, %v134_v46 }
 0x126   :  { %v157_v48 = vpop.f32.mrf.mxu0 }
 0x127   :  { %v158_v49 = vadd.f32 %v196_v47, %v157_v48 }
 0x129   :  { %161 = vst [vmem:[#allocation8] sm:$0xf] %v158_v49 }
 0x12a   :  { %172 = dma.vmem_to_hbm [thread:$0]  %s168_s25, 64, %s170_s28, [#allocation5]  }
 0x12e   :  { %v159_v50 = vpop.f32.mrf.mxu0 }
 0x12f   :  { %273 = dma.done.wait [#allocation5], 64  }
 0x130   :  { %274 = vsyncadd [#allocation5], 4294967232 }
 0x131   :  { %177 = vsyncpa [#allocation4], 1 }
 0x132   :  { %178 = vsyncpa [#allocation7], 1 }
 0x133   :  { %179 = vsyncpa [#allocation5], 1 }

</bundles_post_ra>
